<compile_context>
chip_gen: v5e
topology: v5e:2x2
jax: 0.10.0
libtpu: 0.0.40
codegen_flags: <defaults>
</compile_context>

<pallas_src>
import jax
import jax.numpy as jnp
import numpy as np
from jax.experimental import pallas as pl
from jax.experimental.pallas import tpu as pltpu

_LANE = 128
_SUBLANE = 8
# Below this many output elements, skip Pallas entirely (launch cost >> work).
_FAST_PATH_ELEMS = 64 * 1024


def _model_kernel(x1_ref, x2_ref, o_ref):
    out_dtype = o_ref.dtype
    a = x1_ref[...].astype(out_dtype)                 # (TB, d1), cast in-kernel
    b = x2_ref[...].astype(out_dtype)                 # (TB, d2)
    ab = jnp.concatenate([a, b], axis=1)              # v1 (== v2), (TB, d1+d2)
    r = jnp.maximum(ab, jnp.zeros_like(ab))           # relu of each v8 half
    # out = [v1 | relu(v1) | relu(v1)]  (relu(cat(v1, v1)) == cat(relu(v1), relu(v1)))
    # NOTE: 15 < 128 lanes -> this is a masked store; see header comment.
    o_ref[...] = jnp.concatenate([ab, r, r], axis=1)


def _fused_jnp(x1, x2, out_dtype):
    a = x1.astype(out_dtype)
    b = x2.astype(out_dtype)
    v1 = jnp.concatenate([a, b], axis=1)
    r = jnp.maximum(v1, jnp.zeros_like(v1))
    return jnp.concatenate([v1, r, r], axis=1)


def _round_up(x, m):
    return ((x + m - 1) // m) * m


def _padded_cols(d):
    return _round_up(d, _LANE)


def model_forward(x1, x2, *, tb: int = 4096, force_pallas: bool = False):
    B, d1 = x1.shape
    B2, d2 = x2.shape
    if B != B2:
        raise ValueError(f"batch mismatch: {B} vs {B2}")

    # torch.cat promotes to a common dtype; the cast itself happens in-kernel.
    out_dtype = jnp.result_type(x1.dtype, x2.dtype)
    out_dim = 3 * (d1 + d2)

    # Fast path: tiny problems are launch-overhead dominated; let XLA fuse.
    if not force_pallas and B * out_dim < _FAST_PATH_ELEMS:
        return _fused_jnp(x1, x2, out_dtype)

    # --- Tile selection -----------------------------------------------------
    if B <= tb:
        # Single step; block == full batch dim is always legal (incl. B < 8).
        TB = B
    else:
        # Multi-tile: force an EVEN number of grid steps so v7x's two
        # TensorCores (sharding the "parallel" axis) get balanced work.
        steps = pl.cdiv(B, tb)
        if steps % 2:
            steps += 1
        TB = _round_up(pl.cdiv(B, steps), _SUBLANE)
    grid = (pl.cdiv(B, TB),)

    # --- Scoped VMEM sizing ---------------------------------------------------
    # Double-buffered, lane/sublane-padded footprint of the three blocks.
    itemsize = max(jnp.dtype(x1.dtype).itemsize,
                   jnp.dtype(x2.dtype).itemsize,
                   jnp.dtype(out_dtype).itemsize)
    rows = _round_up(TB, _SUBLANE)
    per_buffer = rows * (_padded_cols(d1) + _padded_cols(d2)
                         + _padded_cols(out_dim)) * itemsize
    vmem_needed = 2 * per_buffer                      # 2-deep pipelining
    # Generous headroom, but never above v7x's 64 MiB physical per-TC VMEM.
    vmem_limit = int(min(max(2 * vmem_needed, 16 * 1024 * 1024),
                         60 * 1024 * 1024))

    return pl.pallas_call(
        _model_kernel,
        out_shape=jax.ShapeDtypeStruct((B, out_dim), out_dtype),
        grid=grid,
        in_specs=[
            pl.BlockSpec((TB, d1), lambda i: (i, 0)),
            pl.BlockSpec((TB, d2), lambda i: (i, 0)),
        ],
        out_specs=pl.BlockSpec((TB, out_dim), lambda i: (i, 0)),
        compiler_params=pltpu.CompilerParams(
            dimension_semantics=("parallel",),
            vmem_limit_bytes=vmem_limit,
        ),
    )(x1, x2)


def model_ref(x1, x2):
    """Literal translation of the PyTorch forward."""
    dt = jnp.result_type(x1.dtype, x2.dtype)
    a = x1.astype(dt)
    b = x2.astype(dt)
    v1 = jnp.concatenate([a, b], axis=1)
    v2 = jnp.concatenate([a, b], axis=1)
    v8 = jnp.concatenate([v1, v2], axis=1)
    y = jnp.maximum(v8, jnp.zeros_like(v8))
    return jnp.concatenate([v1, y], axis=1)


if __name__ == "__main__":
    key = jax.random.PRNGKey(0)
    k1, k2, k3, k4, k5, k6 = jax.random.split(key, 6)

    # 1) Spec shapes from the module: x1 (1, 2), x2 (1, 3).
    #    Force the Pallas path so the kernel itself is exercised once.
    x1 = jax.random.normal(k1, (1, 2), dtype=jnp.float32)
    x2 = jax.random.normal(k2, (1, 3), dtype=jnp.float32)
    out = jax.block_until_ready(model_forward(x1, x2, force_pallas=True))
    ref = model_ref(x1, x2)
    assert out.shape == (1, 15), out.shape
    np.testing.assert_allclose(np.asarray(out), np.asarray(ref),
                               rtol=1e-6, atol=1e-6)

    # 2) Same spec shapes through the default (fast, fused-jnp) path.
    out_fast = jax.block_until_ready(model_forward(x1, x2))
    np.testing.assert_allclose(np.asarray(out_fast), np.asarray(ref),
                               rtol=1e-6, atol=1e-6)

    # 3) Larger batch exercises the tiled, double-buffered, megacore-parallel
    #    Pallas path with an even grid split (B=8392, tb=4096 -> 4 steps).
    Bbig = 8392
    y1 = jax.random.normal(k3, (Bbig, 2), dtype=jnp.float32)
    y2 = jax.random.normal(k4, (Bbig, 3), dtype=jnp.float32)
    out_big = jax.block_until_ready(model_forward(y1, y2))
    ref_big = model_ref(y1, y2)
    assert out_big.shape == (Bbig, 15), out_big.shape
    np.testing.assert_allclose(np.asarray(out_big), np.asarray(ref_big),
                               rtol=1e-6, atol=1e-6)

    # 4) Mixed dtypes: promotion happens in-kernel (matches torch.cat).
    z1 = jax.random.normal(k5, (64, 2), dtype=jnp.bfloat16)
    z2 = jax.random.normal(k6, (64, 3), dtype=jnp.float32)
    out_mix = jax.block_until_ready(model_forward(z1, z2, force_pallas=True))
    ref_mix = model_ref(z1, z2)
    assert out_mix.dtype == ref_mix.dtype
    np.testing.assert_allclose(np.asarray(out_mix), np.asarray(ref_mix),
                               rtol=1e-2, atol=1e-2)

    print("KERNEL_OK")
</pallas_src>

<mosaic_0001>
module attributes {stable_mosaic.version = 11 : i64} {
  func.func @_model_kernel(%arg0: i32, %arg1: memref<1x2xf32, #tpu.memory_space<vmem>>, %arg2: memref<1x3xf32, #tpu.memory_space<vmem>>, %arg3: memref<1x15xf32, #tpu.memory_space<vmem>>) attributes {dimension_semantics = [#tpu.dimension_semantics<parallel>], iteration_bounds = array<i64: 1>, scalar_prefetch = 0 : i64, scratch_operands = 0 : i64, tpu.core_type = #tpu.core_type<tc>, window_params = [{transform_indices = @transform_0, window_bounds = array<i64: 1, 2>}, {transform_indices = @transform_1, window_bounds = array<i64: 1, 3>}, {transform_indices = @transform_2, window_bounds = array<i64: 1, 15>}]} {
    %c0 = arith.constant 0 : index
    %c0_0 = arith.constant 0 : index
    %0 = vector.load %arg1[%c0, %c0_0] : memref<1x2xf32, #tpu.memory_space<vmem>>, vector<1x2xf32>
    %c0_1 = arith.constant 0 : index
    %c0_2 = arith.constant 0 : index
    %1 = vector.load %arg2[%c0_1, %c0_2] : memref<1x3xf32, #tpu.memory_space<vmem>>, vector<1x3xf32>
    %2 = tpu.concatenate %0, %1 in 1 : vector<1x2xf32>, vector<1x3xf32> -> vector<1x5xf32>
    %cst = arith.constant 0.000000e+00 : f32
    %3 = vector.broadcast %cst : f32 to vector<1x5xf32>
    %4 = arith.maximumf %2, %3 : vector<1x5xf32>
    %5 = tpu.concatenate %2, %4, %4 in 1 : vector<1x5xf32>, vector<1x5xf32>, vector<1x5xf32> -> vector<1x15xf32>
    %c0_3 = arith.constant 0 : index
    %c0_4 = arith.constant 0 : index
    %6 = vector.load %arg3[%c0_3, %c0_4] : memref<1x15xf32, #tpu.memory_space<vmem>>, vector<1x15xf32>
    tpu.vector_store %arg3[%c0_3, %c0_4], %5 {strides = array<i32>} : memref<1x15xf32, #tpu.memory_space<vmem>>, vector<1x15xf32>,
    return
  }
  func.func @transform_0(%arg0: i32) -> (i32, i32) {
    %c0_i32 = arith.constant 0 : i32
    %c0_i32_0 = arith.constant 0 : i32
    return %arg0, %c0_i32 : i32, i32
  }
  func.func @transform_1(%arg0: i32) -> (i32, i32) {
    %c0_i32 = arith.constant 0 : i32
    %c0_i32_0 = arith.constant 0 : i32
    return %arg0, %c0_i32 : i32, i32
  }
  func.func @transform_2(%arg0: i32) -> (i32, i32) {
    %c0_i32 = arith.constant 0 : i32
    %c0_i32_0 = arith.constant 0 : i32
    return %arg0, %c0_i32 : i32, i32
  }
}

</mosaic_0001>

<bundles_post_ra>
// kernel: tpu_custom_call.1
= control target key start
LH: loop header
LB: loop body
LE: loop exit
PB: predicated region body
PF: predicated region fallthrough
CT: control target
= control target key end

     0   :  { %7 = vsyncpa [#allocation3], 0  ;;  %s196_s0 = inlined_call_operand.hbm [shape: f32[1,2], index: 0, kind: input, shape index: {}]   ;;  %s197_s1 = inlined_call_operand.hbm [shape: f32[1,3], index: 1, kind: input, shape index: {}]   ;;  %s198_s2 = inlined_call_operand.hbm [shape: f32[1,15], index: 2, kind: output, shape index: {}]  }
   0x1   :  { %8 = vsyncpa [#allocation6], 0 }
   0x2   :  { %9 = vsyncpa [#allocation4], 0  ;;  %s15_s11 = sshll.u32 %s196_s0, 4  ;;  %s166_s12 = smov [#allocation2]   ;;  %s16_s11 = int_to_ptr.hbm [resolvable:$true] %s15_s11 }
   0x3   :  { %s17_s13 = sshll.u32 %s166_s12, 4  ;;  %s26_s16 = sshll.u32 %s197_s1, 4  ;;  %s18_s13 = int_to_ptr.vmem [resolvable:$true] %s17_s13  ;;  %s27_s16 = int_to_ptr.hbm [resolvable:$true] %s26_s16 }
   0x4   :  { %20 = dma.hbm_to_vmem [thread:$0]  %s16_s11, 16, %s18_s13, [#allocation3]  }
   0x5   :  { %s167_s17 = smov [#allocation5]  }
   0x6   :  { %s28_s18 = sshll.u32 %s167_s17, 4  ;;  %s29_s18 = int_to_ptr.vmem [resolvable:$true] %s28_s18 }
   0x7   :  { %31 = dma.hbm_to_vmem [thread:$0]  %s27_s16, 16, %s29_s18, [#allocation6]  }
   0x8   :  { %160 = dma.done.wait [#allocation3], 16  }
   0x9   :  { %161 = vsyncadd [#allocation3], 4294967280 }
   0xa   :  { %162 = dma.done.wait [#allocation6], 16  }
   0xb   :  { %163 = vsyncadd [#allocation6], 4294967280  ;;  %v87_v0 = vld [vmem:[#allocation5] ss:$0 sm:$0xff]  ;;  %s168_s0 = smov 2   ;;  %vm47_vm0 = vcmask 15360  }
   0xc   :  { %44 = vrot.lane.b32.xlu0 %v87_v0, %s168_s0  ;;  %v40_v1 = vld [vmem:[#allocation2] sm:$0x1]  ;;  %s169_s19 = smov 10   ;;  %s170_s1 = smov 5   ;;  %vm57_vm1 = vcmask 39936   ;;  %vm59_vm2 = vcmask 80896  }
   0xd   :  { %s171_s20 = smov [#allocation7]   ;;  %s70_s24 = sshll.u32 %s198_s2, 4  ;;  %vm61_vm3 = vcmask 114688   ;;  %s71_s24 = int_to_ptr.hbm [resolvable:$true] %s70_s24 }
   0xe   :  { %s68_s21 = sshll.u32 %s171_s20, 4  ;;  %s69_s21 = int_to_ptr.vmem [resolvable:$true] %s68_s21 }
  0x7e   :  { %v45_v2 = vpop.permute.xlu0 %44 }
  0x7f   :  { %v48_v3 = vsel %vm47_vm0, %v40_v1, %v45_v2 }
  0x80   :  { %v49_v4 = vmax.f32 %v48_v3, 0.0 }
  0x82   :  { %54 = vrot.lane.b32.xlu1 %v49_v4, %s169_s19  ;;  %51 = vrot.lane.b32.xlu0 %v49_v4, %s170_s1 }
  0xf4   :  { %v55_v5 = vpop.permute.xlu1 %54  ;;  %v52_v6 = vpop.permute.xlu0 %51 }
  0xf5   :  { %v58_v7 = vsel %vm57_vm1, %v48_v3, %v52_v6 }
  0xf6   :  { %v60_v8 = vsel %vm59_vm2, %v58_v7, %v55_v5 }
  0xf7   :  { %62 = vst.msk [vmem:[#allocation7] sm:$0x1] %vm61_vm3, %v60_v8 }
  0xf8   :  { %73 = dma.vmem_to_hbm [thread:$0]  %s69_s21, 16, %s71_s24, [#allocation4]  }
  0xf9   :  { %164 = dma.done.wait [#allocation4], 16  }
  0xfa   :  { %165 = vsyncadd [#allocation4], 4294967280 }
  0xfb   :  { %78 = vsyncpa [#allocation3], 1 }
  0xfc   :  { %79 = vsyncpa [#allocation6], 1 }
  0xfd   :  { %80 = vsyncpa [#allocation4], 1 }

</bundles_post_ra>
